<compile_context>
chip_gen: v5e
topology: v5e:2x2
jax: 0.10.0
libtpu: 0.0.40
codegen_flags: <defaults>
</compile_context>

<pallas_src>
import functools

import jax
import jax.numpy as jnp
from jax.experimental import pallas as pl
from jax.experimental.pallas import tpu as pltpu


def _round_up(x, m):
    return (x + m - 1) // m * m


def _choose_row_tile(M, Dp, act_itemsize, row_budget_bytes=24 << 20):
    """Pick (tm, m_pad): row tile (multiple of 16) and padded row count.

    Keeps per-tile activation VMEM (x in 2 bufs + f32 out in 2 bufs + carry scratch)
    under `row_budget_bytes`, avoids large padding blow-ups, and prefers >= 2 row
    tiles when M is big enough so the "parallel" row axis can split across TCs.
    """
    m16 = _round_up(M, 16)
    per_row = Dp * (2 * act_itemsize + 2 * 4 + act_itemsize)
    cap = max(128, min(2048, (row_budget_bytes // per_row) // 16 * 16))

    if m16 <= cap:
        if m16 >= 256:
            # >= 2 row tiles so megacore / v7x 2-TC sharding has something to split.
            tm = _round_up((m16 + 1) // 2, 16)
            return tm, 2 * tm
        return m16, m16

    cands = [(_round_up(m16, tm), tm) for tm in range(128, cap + 1, 16)]
    min_pad = min(p for p, _ in cands)
    # Among candidates within ~5% extra padded rows of the minimum, take the largest
    # tile (fewer grid steps amortize the ~0.35us per-step overhead).
    ok = [(p, tm) for p, tm in cands if p <= int(min_pad * 1.05) + 16]
    m_pad, tm = max(ok, key=lambda pt: pt[1])
    return tm, m_pad


def _fused_stack(x2d, w_stack, b_stack, tm, cost):
    """One pallas_call running the whole layer stack on a padded 2-D slab.

    x2d:     (Mp, Dp) compute-dtype, Mp % tm == 0, Dp % 128 == 0 (lane-dense)
    w_stack: (L, Dp, Dp) compute-dtype (zero-padded per layer) — STREAMED per layer
    b_stack: (L, 1, Dp)  f32 (zero-padded per layer)           — streamed per layer
    """
    Mp, Dp = x2d.shape
    L = w_stack.shape[0]
    compute_dtype = x2d.dtype
    act_bytes = x2d.dtype.itemsize
    w_bytes = w_stack.dtype.itemsize

    def kernel(x_ref, w_ref, b_ref, o_ref, h_ref):
        l = pl.program_id(1)

        # Layer 0: pull the row tile of x into the carried activation scratch.
        @pl.when(l == 0)
        def _():
            h_ref[...] = x_ref[...]

        # MXU matmul (f32 accumulate) + f32 bias-add + f32 tanh (EUP).
        y = jnp.dot(h_ref[...], w_ref[0], preferred_element_type=jnp.float32)
        h = jnp.tanh(y + b_ref[0])
        h_ref[...] = h.astype(h_ref.dtype)      # carry to next layer (on-chip only)

        # Final layer: lane-dense f32 store. Dropout == identity in eval mode.
        @pl.when(l == L - 1)
        def _():
            o_ref[...] = h.astype(o_ref.dtype)

    # Scoped-VMEM budget from the actual buffers (+50% headroom), >= default 32 MiB.
    vmem_bytes = (
        2 * tm * Dp * act_bytes      # x row tile, double-buffered
        + 2 * tm * Dp * 4            # f32 output tile, double-buffered
        + 2 * Dp * Dp * w_bytes      # streamed weight slab, double-buffered
        + 2 * Dp * 4                 # streamed bias, double-buffered
        + tm * Dp * act_bytes        # carried activation scratch
    )
    vmem_limit = max(32 << 20, min(100 << 20, int(vmem_bytes * 1.5) + (4 << 20)))

    return pl.pallas_call(
        kernel,
        out_shape=jax.ShapeDtypeStruct((Mp, Dp), jnp.float32),
        grid_spec=pltpu.PrefetchScalarGridSpec(
            num_scalar_prefetch=0,
            grid=(Mp // tm, L),                                  # layer axis innermost
            in_specs=[
                pl.BlockSpec((tm, Dp), lambda i, l: (i, 0)),     # row tile (re-DMA only on new i)
                pl.BlockSpec((1, Dp, Dp), lambda i, l: (l, 0, 0)),  # stream one weight slab/layer
                pl.BlockSpec((1, 1, Dp), lambda i, l: (l, 0, 0)),   # stream one bias row/layer
            ],
            out_specs=pl.BlockSpec((tm, Dp), lambda i, l: (i, 0)),  # lane-dense, resident over l
            scratch_shapes=[pltpu.VMEM((tm, Dp), compute_dtype)],   # activation carried over l
        ),
        compiler_params=pltpu.CompilerParams(
            # Rows are embarrassingly parallel (megacore / v7x 2-TC); layer axis carries state.
            dimension_semantics=("parallel", "arbitrary"),
            vmem_limit_bytes=vmem_limit,
        ),
        cost_estimate=cost,
    )(x2d, w_stack, b_stack)


def init_lin_stack_params(key, num_layers, in_dim, hidden_dim, out_dim):
    """PyTorch-style init: U(-1/sqrt(fan_in), 1/sqrt(fan_in)); W stored as (d_in, d_out)."""
    params = []
    for i in range(num_layers):
        d_in = hidden_dim if i > 0 else in_dim
        d_out = hidden_dim if i < num_layers - 1 else out_dim
        key, kw, kb = jax.random.split(key, 3)
        bound = 1.0 / jnp.sqrt(jnp.float32(d_in))
        w = jax.random.uniform(kw, (d_in, d_out), jnp.float32, -bound, bound)
        b = jax.random.uniform(kb, (d_out,), jnp.float32, -bound, bound)
        params.append((w, b))
    return params


def pack_params(params, d_pad, compute_dtype=jnp.float32):
    """Zero-pad each (W, b) to (d_pad, d_pad)/(d_pad,) and stack into single arrays.

    Padded rows/cols and biases are exactly zero, so tanh(0) = 0 padding never
    contaminates the real output columns at any depth.  Weights are stored in
    `compute_dtype` (f32, or bf16 for the v6e/v7x MXU fast path); biases stay f32.
    """
    num_layers = len(params)
    w_stack = jnp.zeros((num_layers, d_pad, d_pad), jnp.float32)
    b_stack = jnp.zeros((num_layers, 1, d_pad), jnp.float32)
    for i, (w, b) in enumerate(params):
        d_in, d_out = w.shape
        w_stack = w_stack.at[i, :d_in, :d_out].set(w)
        b_stack = b_stack.at[i, 0, :d_out].set(b)
    return w_stack.astype(compute_dtype), b_stack


@functools.partial(jax.jit, static_argnames=("hidden_dim", "out_dim"))
def lin_stack_forward(w_stack, b_stack, x, hidden_dim, out_dim):
    """x: (B, S, in_dim) -> (B, S, out_dim) in f32.  dp (dropout) is identity in eval mode."""
    B, S, in_dim = x.shape
    L, d_pad, _ = w_stack.shape
    M = B * S
    compute_dtype = w_stack.dtype

    tm, m_pad = _choose_row_tile(M, d_pad, jnp.dtype(compute_dtype).itemsize)

    x2d = x.reshape(M, in_dim).astype(compute_dtype)
    x2d = jnp.pad(x2d, ((0, m_pad - M), (0, d_pad - in_dim)))   # lane-dense (d_pad % 128 == 0)

    # Advisory cost from the REAL (unpadded) dims.
    dims = [in_dim] + [hidden_dim] * (L - 1) + [out_dim]
    w_item = jnp.dtype(compute_dtype).itemsize
    flops = sum(2 * M * dims[i] * dims[i + 1] for i in range(L))
    transcendentals = sum(M * dims[i + 1] for i in range(L))
    bytes_accessed = (
        M * in_dim * w_item + M * out_dim * 4
        + sum(dims[i] * dims[i + 1] * w_item + dims[i + 1] * 4 for i in range(L))
    )
    cost = pl.CostEstimate(flops=flops, transcendentals=transcendentals,
                           bytes_accessed=bytes_accessed)

    out = _fused_stack(x2d, w_stack, b_stack, tm, cost)
    return out[:M, :out_dim].reshape(B, S, out_dim)


def reference_forward(params, x, compute_dtype=jnp.float32):
    """Pure-JAX reference matching the kernel's precision policy (no Pallas, unpadded)."""
    B, S, d_in = x.shape
    h = x.reshape(B * S, d_in).astype(compute_dtype)
    out = None
    for w, b in params:
        y = jnp.dot(h, w.astype(compute_dtype), preferred_element_type=jnp.float32)
        out = jnp.tanh(y + b)                 # f32 bias-add + tanh
        h = out.astype(compute_dtype)         # carried activation dtype
    return out.reshape(B, S, -1)


if __name__ == "__main__":
    key = jax.random.PRNGKey(0)
    num_layers, in_dim, hidden_dim, out_dim, dp = 3, 32, 32, 16, 0.1
    B, S = 2, 8

    kparams, kx = jax.random.split(key)
    params = init_lin_stack_params(kparams, num_layers, in_dim, hidden_dim, out_dim)
    d_pad = _round_up(max(in_dim, hidden_dim, out_dim), 128)
    x = jax.random.normal(kx, (B, S, in_dim), jnp.float32)

    # --- f32 path (numerical parity with the PyTorch module) ---
    w32, b32 = pack_params(params, d_pad, jnp.float32)
    out32 = jax.block_until_ready(
        lin_stack_forward(w32, b32, x, hidden_dim=hidden_dim, out_dim=out_dim))
    ref32 = reference_forward(params, x, jnp.float32)
    assert out32.shape == (B, S, out_dim)
    assert jnp.allclose(out32, ref32, atol=2e-5, rtol=2e-5), \
        float(jnp.max(jnp.abs(out32 - ref32)))

    # --- bf16 MXU path (v6e/v7x fast path: bf16 operands, f32 accumulate/bias/tanh) ---
    wbf, bbf = pack_params(params, d_pad, jnp.bfloat16)
    outbf = jax.block_until_ready(
        lin_stack_forward(wbf, bbf, x, hidden_dim=hidden_dim, out_dim=out_dim))
    refbf = reference_forward(params, x, jnp.bfloat16)
    assert outbf.shape == (B, S, out_dim)
    assert jnp.allclose(outbf, refbf, atol=2e-2, rtol=2e-2), \
        float(jnp.max(jnp.abs(outbf - refbf)))

    print("KERNEL_OK")
</pallas_src>

<mosaic_0001>
module attributes {stable_mosaic.version = 11 : i64} {
  func.func @kernel(%arg0: i32, %arg1: i32, %arg2: memref<16x128xf32, #tpu.memory_space<vmem>>, %arg3: memref<1x128x128xf32, #tpu.memory_space<vmem>>, %arg4: memref<1x1x128xf32, #tpu.memory_space<vmem>>, %arg5: memref<16x128xf32, #tpu.memory_space<vmem>>, %arg6: memref<16x128xf32, #tpu.memory_space<vmem>>) attributes {dimension_semantics = [#tpu.dimension_semantics<parallel>, #tpu.dimension_semantics<arbitrary>], iteration_bounds = array<i64: 1, 3>, scalar_prefetch = 0 : i64, scratch_operands = 1 : i64, tpu.core_type = #tpu.core_type<tc>, window_params = [{transform_indices = @transform_0, window_bounds = array<i64: 16, 128>}, {transform_indices = @transform_1, window_bounds = array<i64: 1, 128, 128>}, {transform_indices = @transform_2, window_bounds = array<i64: 1, 1, 128>}, {transform_indices = @transform_3, window_bounds = array<i64: 16, 128>}]} {
    %c0_i32 = arith.constant 0 : i32
    %0 = arith.cmpi eq, %arg1, %c0_i32 : i32
    %1 = arith.extui %0 : i1 to i32
    %c0_i32_0 = arith.constant 0 : i32
    %2 = arith.cmpi ne, %1, %c0_i32_0 : i32
    scf.if %2 {
      %c0_11 = arith.constant 0 : index
      %c0_12 = arith.constant 0 : index
      %16 = vector.load %arg2[%c0_11, %c0_12] : memref<16x128xf32, #tpu.memory_space<vmem>>, vector<16x128xf32>
      %c0_13 = arith.constant 0 : index
      %c0_14 = arith.constant 0 : index
      %17 = vector.load %arg6[%c0_13, %c0_14] : memref<16x128xf32, #tpu.memory_space<vmem>>, vector<16x128xf32>
      tpu.vector_store %arg6[%c0_13, %c0_14], %16 {strides = array<i32>} : memref<16x128xf32, #tpu.memory_space<vmem>>, vector<16x128xf32>,
    } else {
    }
    %c0 = arith.constant 0 : index
    %c0_1 = arith.constant 0 : index
    %3 = vector.load %arg6[%c0, %c0_1] : memref<16x128xf32, #tpu.memory_space<vmem>>, vector<16x128xf32>
    %c0_2 = arith.constant 0 : index
    %c0_3 = arith.constant 0 : index
    %c0_4 = arith.constant 0 : index
    %4 = vector.load %arg3[%c0_2, %c0_3, %c0_4] : memref<1x128x128xf32, #tpu.memory_space<vmem>>, vector<1x128x128xf32>
    %5 = vector.shape_cast %4 : vector<1x128x128xf32> to vector<128x128xf32>
    %cst = arith.constant dense<0.000000e+00> : vector<16x128xf32>
    %6 = tpu.matmul %3, %5, %cst {dimension_numbers = #tpu.dot_dimension_numbers<[1], [0], [0], [1], [0, 0, 1, 1], [], []>} : vector<16x128xf32>, vector<128x128xf32>, vector<16x128xf32> -> vector<16x128xf32>
    %c0_5 = arith.constant 0 : index
    %c0_6 = arith.constant 0 : index
    %c0_7 = arith.constant 0 : index
    %7 = vector.load %arg4[%c0_5, %c0_6, %c0_7] : memref<1x1x128xf32, #tpu.memory_space<vmem>>, vector<1x1x128xf32>
    %8 = vector.shape_cast %7 : vector<1x1x128xf32> to vector<1x128xf32>
    %9 = vector.broadcast %8 : vector<1x128xf32> to vector<16x128xf32>
    %10 = arith.addf %6, %9 : vector<16x128xf32>
    %11 = math.tanh %10 : vector<16x128xf32>
    %c0_8 = arith.constant 0 : index
    %c0_9 = arith.constant 0 : index
    %12 = vector.load %arg6[%c0_8, %c0_9] : memref<16x128xf32, #tpu.memory_space<vmem>>, vector<16x128xf32>
    tpu.vector_store %arg6[%c0_8, %c0_9], %11 {strides = array<i32>} : memref<16x128xf32, #tpu.memory_space<vmem>>, vector<16x128xf32>,
    %c2_i32 = arith.constant 2 : i32
    %13 = arith.cmpi eq, %arg1, %c2_i32 : i32
    %14 = arith.extui %13 : i1 to i32
    %c0_i32_10 = arith.constant 0 : i32
    %15 = arith.cmpi ne, %14, %c0_i32_10 : i32
    scf.if %15 {
      %c0_11 = arith.constant 0 : index
      %c0_12 = arith.constant 0 : index
      %16 = vector.load %arg5[%c0_11, %c0_12] : memref<16x128xf32, #tpu.memory_space<vmem>>, vector<16x128xf32>
      tpu.vector_store %arg5[%c0_11, %c0_12], %11 {strides = array<i32>} : memref<16x128xf32, #tpu.memory_space<vmem>>, vector<16x128xf32>,
    } else {
    }
    return
  }
  func.func @transform_0(%arg0: i32, %arg1: i32) -> (i32, i32) {
    %c0_i32 = arith.constant 0 : i32
    %c0_i32_0 = arith.constant 0 : i32
    return %arg0, %c0_i32 : i32, i32
  }
  func.func @transform_1(%arg0: i32, %arg1: i32) -> (i32, i32, i32) {
    %c0_i32 = arith.constant 0 : i32
    %c0_i32_0 = arith.constant 0 : i32
    %c0_i32_1 = arith.constant 0 : i32
    return %arg1, %c0_i32, %c0_i32_0 : i32, i32, i32
  }
  func.func @transform_2(%arg0: i32, %arg1: i32) -> (i32, i32, i32) {
    %c0_i32 = arith.constant 0 : i32
    %c0_i32_0 = arith.constant 0 : i32
    %c0_i32_1 = arith.constant 0 : i32
    return %arg1, %c0_i32, %c0_i32_0 : i32, i32, i32
  }
  func.func @transform_3(%arg0: i32, %arg1: i32) -> (i32, i32) {
    %c0_i32 = arith.constant 0 : i32
    %c0_i32_0 = arith.constant 0 : i32
    return %arg0, %c0_i32 : i32, i32
  }
}

</mosaic_0001>

<bundles_post_ra>
// kernel: lin_stack_forward.1
= control target key start
LH: loop header
LB: loop body
LE: loop exit
PB: predicated region body
PF: predicated region fallthrough
CT: control target
= control target key end

     0   :  { %8 = vsyncpa [#allocation4], 0  ;;  %s728_s0 = inlined_call_operand.vmem [shape: f32[16,128], index: 0, kind: input, shape index: {}]   ;;  %s729_s1 = inlined_call_operand.hbm [shape: f32[3,128,128], index: 1, kind: input, shape index: {}]   ;;  %s730_s2 = inlined_call_operand.vmem [shape: f32[3,1,128], index: 2, kind: input, shape index: {}]   ;;  %s731_s3 = inlined_call_operand.vmem [shape: f32[16,128], index: 3, kind: output, shape index: {}]  }
   0x1   :  { %10 = vsyncpa [#allocation4 + $0x1], 0  ;;  %s600_s12 = smov 0   ;;  %s602_s13 = smov 0  }
   0x2   :  { %s604_s14 = smov 0   ;;  %s606_s15 = smov 0  }
   0x3   :  { %s608_s16 = smov 0   ;;  %s610_s17 = smov 0  }
   0x4 LB: > { %s402_s18 = sadd.s32 4294967295, %s576_s17   ;;  %s25_s19 = sadd.s32 1, %s572_s16  ;;  %s576_s17 = sphi %s610_s17, %s16_s17   ;;  %s572_s16 = sphi %s608_s16, %s738_s16   ;;  %s568_s15 = sphi %s606_s15, %s737_s15   ;;  %s564_s14 = sphi %s604_s14, %s736_s14   ;;  %s560_s13 = sphi %s602_s13, %s735_s13   ;;  %s556_s12 = sphi %s600_s12, %s734_s12  }
   0x5   : > { %p26_p0 = scmp.ge.s32.totalorder %s25_s19, 3  ;;  %s61_s20 = sadd.s32 1, %s564_s14 }
   0x6   : > { %p68_p1 = scmp.ne.s32.totalorder %s564_s14, %s560_s13  ;;  %p69_p2 = scmp.eq.s32.totalorder %s576_s17, 0 }
   0x7   : > { %s740_s19 = smov (%p26_p0, %s25_s19), 0  ;;  %p74_p4 = scmp.ne.s32.totalorder %s560_s13, %s556_s12 }
   0x8   : > { %p636_p3 = por %p69_p2, %p68_p1  ;;  %s58_s22 = ssub.s32 %s572_s16, %s740_s19 }
   0x9   : > { %p75_p5 = scmp.eq.s32.totalorder %s402_s18, 0  ;;  %p59_p6 = scmp.eq.s32.totalorder %s58_s22, 0 }
   0xa   : > { %p440_p8 = scmp.lt.s32.totalorder %s576_s17, 3  ;;  %s159_s25 = sand.u32 1, %s564_s14  }
   0xb   : > { %p643_p7 = por %p75_p5, %p74_p4  ;;  %s417_s26 = sshll.u32 %s572_s16, 7 }
   0xc   : > { %s649_s24 = scalar_select %p59_p6, %s564_s14, %s61_s20  }
   0xd   : > { %s406_s27 = sshll.u32 %s159_s25, 7  ;;  %s168_s30 = scalar_lea.hbm %s729_s1, %s417_s26 }
   0xe   : > { %s169_s4 = sshll.u32 %s168_s30, 4  ;;  %s163_s5 = scalar_lea.vmem [#allocation3], %s406_s27  ;;  %s170_s4 = int_to_ptr.hbm [resolvable:$true] %s169_s4 }
   0xf   : > { %s171_s6 = sshll.u32 %s163_s5, 4  ;;  %p437_p9 = pnand %p440_p8, %p636_p3  ;;  %s172_s6 = int_to_ptr.vmem [resolvable:$true] %s171_s6 }
  0x10   : > { %p409_p10 = scmp.ge.s32.totalorder %s576_s17, 1  ;;  %p185_p11 = scmp.lt.s32.totalorder %s576_s17, 4 }
  0x11   : > { %s160_s7 = scalar_lea.sflag [#allocation4], %s159_s25  ;;  %s578_s8 = smov 128  }
  0x12   : > { %s579_s9 = smov 8   ;;  %p186_p12 = pnand %p409_p10, %p185_p11 }
  0x13   : > { %439 = dma.hbm_to_vmem [thread:$0]  (!%p437_p9), %s170_s4, 2048, %s172_s6, %s160_s7, %s578_s8, %s578_s8, %s579_s9  }
  0x14   : > { %189 = sbr.rel (%p186_p12) target bundleno = 208 (0xd0), region = 32  ;;  %s191_s10 = sand.u32 (!%p186_p12), 1, %s560_s13  }
  0x15   : > { %s410_s11 = sshll.u32 (!%p186_p12), %s191_s10, 7  ;;  %s192_s12 = scalar_lea.sflag (!%p186_p12), [#allocation4], %s191_s10 }
  0x16   : > { %s661_s18 = scalar_lea.vmem (!%p186_p12), [#allocation3], %s410_s11 }
  0x19   : > { %551 = dma.done.wait (%p643_p7), %s192_s12, 2048  }
  0x1a   : > { %553 = vsyncadd (%p643_p7), %s192_s12, 4294965248  ;;  %p233_p13 = scmp.lt.s32.totalorder %s568_s15, 2  ;;  %p411_p0 = scmp.ne.s32.totalorder %s568_s15, 0 }
  0x1c   : > { %s669_s20 = scalar_select %p233_p13, %s568_s15, 2 }
  0x1d   : > { %245 = sbr.rel (%p411_p0) target bundleno = 37 (0x25), region = 40 }
  0x1e   : > { %s235_s25 = scalar_lea.vmem %s730_s2, %s669_s20 }
  0x22   : > { %v246_v0 = vld [vmem:[%s728_s0] sm:$0xff]  ;;  %v247_v1 = vld [vmem:[%s728_s0 + $0x8] sm:$0xff] }
  0x23   : > { %248 = vst [vmem:[#allocation2] sm:$0xff] %v246_v0 }
  0x24   : > { %249 = vst [vmem:[#allocation2 + $0x8] sm:$0xff] %v247_v1 }
  0x25 PF: > { %v267_v2 = vld [vmem:[%s661_s18 + $0x78] sm:$0xff]  ;;  %v266_v3 = vld [vmem:[%s661_s18 + $0x70] sm:$0xff]  ;;  %v265_v4 = vld [vmem:[%s661_s18 + $0x68] sm:$0xff]  ;;  %p412_p1 = scmp.ne.s32.totalorder %s568_s15, 2 }
  0x26   : > { %272 = vmatpush.msra.mxu0 %v267_v2  ;;  %418 = vmatpush.msra.mxu1 %v267_v2  ;;  %v264_v5 = vld [vmem:[%s661_s18 + $0x60] sm:$0xff]  ;;  %v263_v6 = vld [vmem:[%s661_s18 + $0x58] sm:$0xff]  ;;  %v262_v7 = vld [vmem:[%s661_s18 + $0x50] sm:$0xff] }
  0x27   : > { %v261_v8 = vld [vmem:[%s661_s18 + $0x48] sm:$0xff]  ;;  %v260_v9 = vld [vmem:[%s661_s18 + $0x40] sm:$0xff]  ;;  %v259_v10 = vld [vmem:[%s661_s18 + $0x38] sm:$0xff] }
  0x28   : > { %273 = vmatpush.msra.mxu0 %v266_v3  ;;  %419 = vmatpush.msra.mxu1 %v266_v3  ;;  %v258_v11 = vld [vmem:[%s661_s18 + $0x30] sm:$0xff]  ;;  %v257_v12 = vld [vmem:[%s661_s18 + $0x28] sm:$0xff]  ;;  %v256_v13 = vld [vmem:[%s661_s18 + $0x20] sm:$0xff] }
  0x29   : > { %v255_v14 = vld [vmem:[%s661_s18 + $0x18] sm:$0xff]  ;;  %v254_v15 = vld [vmem:[%s661_s18 + $0x10] sm:$0xff]  ;;  %v253_v16 = vld [vmem:[%s661_s18 + $0x8] sm:$0xff] }
  0x2a   : > { %274 = vmatpush.msra.mxu0 %v265_v4  ;;  %420 = vmatpush.msra.mxu1 %v265_v4  ;;  %v252_v17 = vld [vmem:[%s661_s18] sm:$0xff]  ;;  %v250_v18 = vld [vmem:[#allocation2] sm:$0xff] }
  0x2b   : > { %v251_v19 = vld [vmem:[#allocation2 + $0x8] sm:$0xff]  ;;  %v491_v20 = vld [vmem:[%s235_s25] ss:$0 sm:$0xff] }
  0x2c   : > { %275 = vmatpush.msra.mxu0 %v264_v5  ;;  %421 = vmatpush.msra.mxu1 %v264_v5 }
  0x2e   : > { %276 = vmatpush.msra.mxu0 %v263_v6  ;;  %422 = vmatpush.msra.mxu1 %v263_v6 }
  0x30   : > { %277 = vmatpush.msra.mxu0 %v262_v7  ;;  %423 = vmatpush.msra.mxu1 %v262_v7 }
  0x32   : > { %278 = vmatpush.msra.mxu0 %v261_v8  ;;  %424 = vmatpush.msra.mxu1 %v261_v8 }
  0x34   : > { %279 = vmatpush.msra.mxu0 %v260_v9  ;;  %425 = vmatpush.msra.mxu1 %v260_v9 }
  0x36   : > { %280 = vmatpush.msra.mxu0 %v259_v10  ;;  %426 = vmatpush.msra.mxu1 %v259_v10 }
  0x38   : > { %281 = vmatpush.msra.mxu0 %v258_v11  ;;  %427 = vmatpush.msra.mxu1 %v258_v11 }
  0x3a   : > { %282 = vmatpush.msra.mxu0 %v257_v12  ;;  %428 = vmatpush.msra.mxu1 %v257_v12 }
  0x3c   : > { %283 = vmatpush.msra.mxu0 %v256_v13  ;;  %429 = vmatpush.msra.mxu1 %v256_v13 }
  0x3e   : > { %284 = vmatpush.msra.mxu0 %v255_v14  ;;  %430 = vmatpush.msra.mxu1 %v255_v14 }
  0x40   : > { %285 = vmatpush.msra.mxu0 %v254_v15  ;;  %431 = vmatpush.msra.mxu1 %v254_v15 }
  0x42   : > { %286 = vmatpush.msra.mxu0 %v253_v16  ;;  %432 = vmatpush.msra.mxu1 %v253_v16 }
  0x44   : > { %287 = vmatpush.msra.mxu0 %v252_v17  ;;  %433 = vmatpush.msra.mxu1 %v252_v17 }
  0x45   : > { %288 = vmatmul.f32.vlgmr.msra.gmra.mxu0 %v250_v18  ;;  %291 = vmatmul.f32.vlgmr.msra.gmra.mxu1 %v251_v19 }
  0xc2   : > { %v289_v21 = vpop.f32.mrf.mxu0  ;;  %v292_v22 = vpop.f32.mrf.mxu1 }
  0xc3   : > { %v290_v23 = vadd.f32 %v491_v20, %v289_v21  ;;  %v293_v24 = vadd.f32 %v491_v20, %v292_v22 }
  0xc5   : > { %492 = vtanh.f32 %v290_v23 }
  0xc6   : > { %494 = vtanh.f32 %v293_v24 }
  0xc9   : > { %302 = sbr.rel (%p412_p1) target bundleno = 208 (0xd0), region = 44 }
  0xcb   : > { %v493_v25 = vpop.eup %492 }
  0xcc   : > { %v495_v26 = vpop.eup %494  ;;  %297 = vst [vmem:[#allocation2] sm:$0xff] %v493_v25 }
  0xcd   : > { %298 = vst [vmem:[#allocation2 + $0x8] sm:$0xff] %v495_v26 }
  0xce   : > { %303 = vst [vmem:[%s731_s3] sm:$0xff] %v493_v25 }
  0xcf   : > { %304 = vst [vmem:[%s731_s3 + $0x8] sm:$0xff] %v495_v26 }
  0xd0 PF: > { %s16_s17 = sadd.s32 1, %s576_s17   ;;  %s734_s12 = smov %s560_s13 }
  0xd1   : > { %p13_p2 = scmp.ge.s32.totalorder %s16_s17, 5   ;;  %s735_s13 = smov %s564_s14 }
  0xd2   : > { %s736_s14 = smov %s649_s24  ;;  %s737_s15 = smov %s572_s16 }
  0xd3   : > { %s738_s16 = smov %s740_s19  ;;  %15 = sbr.rel (!%p13_p2) target bundleno = 4 (0x4), region = 86 }
  0xd8   :  { %327 = vsyncpa [#allocation4], 1 }
  0xd9   :  { %329 = vsyncpa [#allocation4 + $0x1], 1 }

</bundles_post_ra>
